<compile_context>
chip_gen: v6e
topology: v6e:2x2x1
jax: 0.10.0
libtpu: 0.0.40
codegen_flags: <defaults>
</compile_context>

<pallas_src>
import jax
import jax.numpy as jnp
from jax.experimental import pallas as pl
from jax.experimental.pallas import tpu as pltpu

IN_FEATURES = 784
HIDDEN = 15
OUT_FEATURES = 10

HIDDEN_PAD = 128   # lane-dense hidden width
OUT_PAD = 128      # lane-dense output width
TB_TARGET = 2048   # batch tile (rows); multiple of 16, amortizes per-step overhead


def fc_kernel(x_ref, w1_ref, b1_ref, w2_ref, b2_ref, o_ref):
    # x_ref: (TB, 784) f32 | w1_ref: (784, 128) bf16 | b1_ref: (1, 128) f32
    # w2_ref: (128, 128) bf16 | b2_ref: (1, 128) f32 | o_ref: (TB, 128) bf16
    x = x_ref[...].astype(jnp.bfloat16)                  # in-kernel cast rides idle VPU slots
    h = jnp.dot(x, w1_ref[...], preferred_element_type=jnp.float32)
    h = jnp.maximum(h + b1_ref[...], 0.0)                # bias + ReLU in f32 (v5e-safe)
    y = jnp.dot(h.astype(jnp.bfloat16), w2_ref[...],
                preferred_element_type=jnp.float32)
    o_ref[...] = (y + b2_ref[...]).astype(o_ref.dtype)   # lane-dense bf16 store


def prepare_params(w1, b1, w2, b2):
    """Pad/cast the constant weights ONCE; cache and reuse across forward calls."""
    w1p = jnp.pad(w1, ((0, 0), (0, HIDDEN_PAD - HIDDEN))).astype(jnp.bfloat16)
    b1p = jnp.pad(b1, ((0, 0), (0, HIDDEN_PAD - HIDDEN))).astype(jnp.float32)
    w2p = jnp.pad(w2, ((0, HIDDEN_PAD - HIDDEN),
                       (0, OUT_PAD - OUT_FEATURES))).astype(jnp.bfloat16)
    b2p = jnp.pad(b2, ((0, 0), (0, OUT_PAD - OUT_FEATURES))).astype(jnp.float32)
    return w1p, b1p, w2p, b2p


def fc_forward(x, w1p, b1p, w2p, b2p):
    """x: (B, 1, 28, 28) f32 (anything that flattens to (-1, 784))."""
    x2d = x.reshape(-1, IN_FEATURES)       # stays f32 — no wrapper cast, no pad copy
    batch = x2d.shape[0]

    # batch <= TB_TARGET: single block equal to the full batch extent (always legal).
    # batch  > TB_TARGET: 2048-row tiles; ragged last tile handled by Pallas masking.
    tb = batch if batch <= TB_TARGET else TB_TARGET
    grid = (pl.cdiv(batch, tb),)

    out = pl.pallas_call(
        fc_kernel,
        out_shape=jax.ShapeDtypeStruct((batch, OUT_PAD), jnp.bfloat16),
        grid=grid,
        in_specs=[
            pl.BlockSpec((tb, IN_FEATURES), lambda i: (i, 0)),          # x: streamed per tile
            pl.BlockSpec((IN_FEATURES, HIDDEN_PAD), lambda i: (0, 0)),  # w1: VMEM-resident
            pl.BlockSpec((1, HIDDEN_PAD), lambda i: (0, 0)),            # b1
            pl.BlockSpec((HIDDEN_PAD, OUT_PAD), lambda i: (0, 0)),      # w2
            pl.BlockSpec((1, OUT_PAD), lambda i: (0, 0)),               # b2
        ],
        out_specs=pl.BlockSpec((tb, OUT_PAD), lambda i: (i, 0)),
        compiler_params=pltpu.CompilerParams(
            dimension_semantics=("parallel",),   # batch tiles shard across v7x's 2 TCs
            vmem_limit_bytes=32 * 1024 * 1024,
        ),
    )(x2d, w1p, b1p, w2p, b2p)

    # Tiny downstream slice (+ cast back to the module's f32 output dtype): ~40 B/row.
    return out[:, :OUT_FEATURES].astype(jnp.float32)


def init_params(key):
    # PyTorch Linear init: U(-1/sqrt(fan_in), 1/sqrt(fan_in)) for W and b.
    k1, k2, k3, k4 = jax.random.split(key, 4)
    bound1 = 1.0 / jnp.sqrt(IN_FEATURES)
    bound2 = 1.0 / jnp.sqrt(HIDDEN)
    w1 = jax.random.uniform(k1, (IN_FEATURES, HIDDEN), jnp.float32, -bound1, bound1)
    b1 = jax.random.uniform(k2, (1, HIDDEN), jnp.float32, -bound1, bound1)
    w2 = jax.random.uniform(k3, (HIDDEN, OUT_FEATURES), jnp.float32, -bound2, bound2)
    b2 = jax.random.uniform(k4, (1, OUT_FEATURES), jnp.float32, -bound2, bound2)
    return w1, b1, w2, b2


if __name__ == "__main__":
    key = jax.random.PRNGKey(0)
    kx, kp = jax.random.split(key)

    # Small MNIST-like input: batch=2, NCHW = (2, 1, 28, 28) -> 784 features.
    x = jax.random.normal(kx, (2, 1, 28, 28), jnp.float32)
    w1, b1, w2, b2 = init_params(kp)
    params = prepare_params(w1, b1, w2, b2)   # constants: pad/cast once, reuse every call

    out = fc_forward(x, *params)
    out = jax.block_until_ready(out)

    # Reference with the same bf16 matmul precision (f32 accumulation), plain JAX.
    x2d = x.reshape(-1, IN_FEATURES)
    h_ref = jnp.maximum(
        jnp.dot(x2d.astype(jnp.bfloat16), w1.astype(jnp.bfloat16),
                preferred_element_type=jnp.float32) + b1, 0.0)
    ref = jnp.dot(h_ref.astype(jnp.bfloat16), w2.astype(jnp.bfloat16),
                  preferred_element_type=jnp.float32) + b2

    assert out.shape == (2, OUT_FEATURES)
    assert jnp.allclose(out, ref, atol=1e-2, rtol=1e-2)

    print("KERNEL_OK")
</pallas_src>

<mosaic_0001>
module attributes {stable_mosaic.version = 11 : i64} {
  func.func @fc_kernel(%arg0: i32, %arg1: memref<2x784xf32, #tpu.memory_space<vmem>>, %arg2: memref<784x128xbf16, #tpu.memory_space<vmem>>, %arg3: memref<1x128xf32, #tpu.memory_space<vmem>>, %arg4: memref<128x128xbf16, #tpu.memory_space<vmem>>, %arg5: memref<1x128xf32, #tpu.memory_space<vmem>>, %arg6: memref<2x128xbf16, #tpu.memory_space<vmem>>) attributes {dimension_semantics = [#tpu.dimension_semantics<parallel>], iteration_bounds = array<i64: 1>, scalar_prefetch = 0 : i64, scratch_operands = 0 : i64, tpu.core_type = #tpu.core_type<tc>, window_params = [{transform_indices = @transform_0, window_bounds = array<i64: 2, 784>}, {pipeline_mode = #tpu.pipeline_mode<synchronous>, transform_indices = @transform_1, window_bounds = array<i64: 784, 128>}, {pipeline_mode = #tpu.pipeline_mode<synchronous>, transform_indices = @transform_2, window_bounds = array<i64: 1, 128>}, {pipeline_mode = #tpu.pipeline_mode<synchronous>, transform_indices = @transform_3, window_bounds = array<i64: 128, 128>}, {pipeline_mode = #tpu.pipeline_mode<synchronous>, transform_indices = @transform_4, window_bounds = array<i64: 1, 128>}, {transform_indices = @transform_5, window_bounds = array<i64: 2, 128>}]} {
    %c0 = arith.constant 0 : index
    %c0_0 = arith.constant 0 : index
    %0 = vector.load %arg1[%c0, %c0_0] : memref<2x784xf32, #tpu.memory_space<vmem>>, vector<2x784xf32>
    %1 = arith.truncf %0 : vector<2x784xf32> to vector<2x784xbf16>
    %c0_1 = arith.constant 0 : index
    %c0_2 = arith.constant 0 : index
    %2 = vector.load %arg2[%c0_1, %c0_2] : memref<784x128xbf16, #tpu.memory_space<vmem>>, vector<784x128xbf16>
    %cst = arith.constant dense<0.000000e+00> : vector<2x128xf32>
    %3 = tpu.matmul %1, %2, %cst {dimension_numbers = #tpu.dot_dimension_numbers<[1], [0], [0], [1], [0, 0, 1, 1], [], []>} : vector<2x784xbf16>, vector<784x128xbf16>, vector<2x128xf32> -> vector<2x128xf32>
    %c0_3 = arith.constant 0 : index
    %c0_4 = arith.constant 0 : index
    %4 = vector.load %arg3[%c0_3, %c0_4] : memref<1x128xf32, #tpu.memory_space<vmem>>, vector<1x128xf32>
    %5 = vector.broadcast %4 : vector<1x128xf32> to vector<2x128xf32>
    %6 = arith.addf %3, %5 : vector<2x128xf32>
    %cst_5 = arith.constant 0.000000e+00 : f32
    %7 = vector.broadcast %cst_5 : f32 to vector<2x128xf32>
    %8 = arith.maximumf %6, %7 : vector<2x128xf32>
    %9 = arith.truncf %8 : vector<2x128xf32> to vector<2x128xbf16>
    %c0_6 = arith.constant 0 : index
    %c0_7 = arith.constant 0 : index
    %10 = vector.load %arg4[%c0_6, %c0_7] : memref<128x128xbf16, #tpu.memory_space<vmem>>, vector<128x128xbf16>
    %cst_8 = arith.constant dense<0.000000e+00> : vector<2x128xf32>
    %11 = tpu.matmul %9, %10, %cst_8 {dimension_numbers = #tpu.dot_dimension_numbers<[1], [0], [0], [1], [0, 0, 1, 1], [], []>} : vector<2x128xbf16>, vector<128x128xbf16>, vector<2x128xf32> -> vector<2x128xf32>
    %c0_9 = arith.constant 0 : index
    %c0_10 = arith.constant 0 : index
    %12 = vector.load %arg5[%c0_9, %c0_10] : memref<1x128xf32, #tpu.memory_space<vmem>>, vector<1x128xf32>
    %13 = vector.broadcast %12 : vector<1x128xf32> to vector<2x128xf32>
    %14 = arith.addf %11, %13 : vector<2x128xf32>
    %15 = arith.truncf %14 : vector<2x128xf32> to vector<2x128xbf16>
    %c0_11 = arith.constant 0 : index
    %c0_12 = arith.constant 0 : index
    %16 = vector.load %arg6[%c0_11, %c0_12] : memref<2x128xbf16, #tpu.memory_space<vmem>>, vector<2x128xbf16>
    tpu.vector_store %arg6[%c0_11, %c0_12], %15 {strides = array<i32>} : memref<2x128xbf16, #tpu.memory_space<vmem>>, vector<2x128xbf16>,
    return
  }
  func.func @transform_0(%arg0: i32) -> (i32, i32) {
    %c0_i32 = arith.constant 0 : i32
    %c0_i32_0 = arith.constant 0 : i32
    return %arg0, %c0_i32 : i32, i32
  }
  func.func @transform_1(%arg0: i32) -> (i32, i32) {
    %c0_i32 = arith.constant 0 : i32
    %c0_i32_0 = arith.constant 0 : i32
    %c0_i32_1 = arith.constant 0 : i32
    return %c0_i32, %c0_i32_0 : i32, i32
  }
  func.func @transform_2(%arg0: i32) -> (i32, i32) {
    %c0_i32 = arith.constant 0 : i32
    %c0_i32_0 = arith.constant 0 : i32
    %c0_i32_1 = arith.constant 0 : i32
    return %c0_i32, %c0_i32_0 : i32, i32
  }
  func.func @transform_3(%arg0: i32) -> (i32, i32) {
    %c0_i32 = arith.constant 0 : i32
    %c0_i32_0 = arith.constant 0 : i32
    %c0_i32_1 = arith.constant 0 : i32
    return %c0_i32, %c0_i32_0 : i32, i32
  }
  func.func @transform_4(%arg0: i32) -> (i32, i32) {
    %c0_i32 = arith.constant 0 : i32
    %c0_i32_0 = arith.constant 0 : i32
    %c0_i32_1 = arith.constant 0 : i32
    return %c0_i32, %c0_i32_0 : i32, i32
  }
  func.func @transform_5(%arg0: i32) -> (i32, i32) {
    %c0_i32 = arith.constant 0 : i32
    %c0_i32_0 = arith.constant 0 : i32
    return %arg0, %c0_i32 : i32, i32
  }
}

</mosaic_0001>

<bundles_post_ra>
// kernel: tpu_custom_call.1
= control target key start
LH: loop header
LB: loop body
LE: loop exit
PB: predicated region body
PF: predicated region fallthrough
CT: control target
= control target key end

     0   :  { %10 = vsyncpa [#allocation3], 0  ;;  %s1194_s0 = inlined_call_operand.hbm [shape: f32[2,784], index: 0, kind: input, shape index: {}]   ;;  %s1195_s1 = inlined_call_operand.hbm [shape: bf16[784,128], index: 1, kind: input, shape index: {}]   ;;  %s1196_s2 = inlined_call_operand.vmem [shape: f32[1,128], index: 2, kind: input, shape index: {}]   ;;  %s1197_s3 = inlined_call_operand.hbm [shape: bf16[128,128], index: 3, kind: input, shape index: {}]   ;;  %s1198_s4 = inlined_call_operand.vmem [shape: f32[1,128], index: 4, kind: input, shape index: {}]   ;;  %s1199_s5 = inlined_call_operand.hbm [shape: bf16[2,128], index: 5, kind: output, shape index: {}]  }
   0x1   :  { %11 = vsyncpa [#allocation6], 0 }
   0x2   :  { %12 = vsyncpa [#allocation4], 0  ;;  %s1123_s18 = smov [#allocation5]  }
   0x3   :  { %s28_s19 = sshll.u32 %s1123_s18, 4  ;;  %s29_s19 = int_to_ptr.vmem [resolvable:$true] %s28_s19 }
   0x4   :  { %s1045_s20 = scalar_lea.vmem %s29_s19, 6272  ;;  %p1050_p1 = scmp.lt.s32.totalorder %s29_s19, %s29_s19 }
   0x5   :  { %p1046_p0 = scmp.ne.s32.totalorder %s29_s19, %s1045_s20  ;;  %p1051_p2 = scmp.lt.s32.totalorder %s1045_s20, %s1045_s20 }
   0x7   :  { %p1052_p3 = por %p1051_p2, %p1050_p1 }
   0x9   :  { %p1053_p4 = pnand %p1052_p3, %p1046_p0 }
   0xb   :  { %1056 = shalt.err (!%p1053_p4)
}
   0xc   :  { %s1124_s21 = smov 64   ;;  %s1125_s22 = smov 4  }
   0xd   :  { %34 = dma.hbm_to_vmem [thread:$0]  %s1195_s1, 6272, %s29_s19, [#allocation6], %s1124_s21, %s1124_s21, %s1125_s22  }
   0xe   :  { %s1126_s25 = smov [#allocation2]   ;;  %s1127_s27 = smov [#allocation7]  }
   0xf   :  { %s19_s26 = sshll.u32 %s1126_s25, 4  ;;  %s42_s28 = sshll.u32 %s1127_s27, 4  ;;  %s20_s26 = int_to_ptr.vmem [resolvable:$true] %s19_s26  ;;  %s43_s28 = int_to_ptr.vmem [resolvable:$true] %s42_s28 }
  0x10   :  { %s1065_s29 = scalar_lea.vmem %s20_s26, 224  ;;  %p1070_p6 = scmp.lt.s32.totalorder %s20_s26, %s20_s26 }
  0x11   :  { %p1066_p5 = scmp.ne.s32.totalorder %s20_s26, %s1065_s29  ;;  %p1071_p7 = scmp.lt.s32.totalorder %s1065_s29, %s1065_s29 }
  0x13   :  { %p1072_p8 = por %p1071_p7, %p1070_p6 }
  0x15   :  { %p1073_p9 = pnand %p1072_p8, %p1066_p5 }
  0x17   :  { %1076 = shalt.err (!%p1073_p9)
}
  0x18   :  { %22 = dma.hbm_to_vmem [thread:$0]  %s1194_s0, 224, %s20_s26, [#allocation3]  }
  0x19   :  { %s1085_s7 = scalar_lea.vmem %s43_s28, 1024  ;;  %p1090_p11 = scmp.lt.s32.totalorder %s43_s28, %s43_s28 }
  0x1a   :  { %p1086_p10 = scmp.ne.s32.totalorder %s43_s28, %s1085_s7  ;;  %p1091_p12 = scmp.lt.s32.totalorder %s1085_s7, %s1085_s7 }
  0x1c   :  { %p1092_p13 = por %p1091_p12, %p1090_p11 }
  0x1e   :  { %p1093_p0 = pnand %p1092_p13, %p1086_p10 }
  0x20   :  { %1096 = shalt.err (!%p1093_p0)
}
  0x21   :  { %48 = dma.hbm_to_vmem [thread:$0]  %s1197_s3, 1024, %s43_s28, [#allocation6], %s1124_s21, %s1124_s21, %s1125_s22  }
  0x22   :  { %1117 = dma.done.wait [#allocation3], 224  }
  0x23   :  { %1118 = vsyncadd [#allocation3], 4294967072 }
  0x24   :  { %1119 = dma.done.wait [#allocation6], 7296  }
  0x25   :  { %1120 = vsyncadd [#allocation6], 4294960000  ;;  %v978_v0 = vld [vmem:[#allocation5 + $0x78] sm:$0xff]   ;;  %v982_v4 = vld [vmem:[#allocation5 + $0x70] sm:$0xff]   ;;  %v1128_v21 = vmov 1983009808   ;;  %v69_v23 = vlaneseq }
  0x26   :  { %v979_v1 = vld [vmem:[#allocation5 + $0x38] sm:$0xff]   ;;  %866 = vmatprep.subr.bf16.mxu0 %v978_v0  ;;  %v983_v5 = vld [vmem:[#allocation5 + $0x30] sm:$0xff]   ;;  %v986_v8 = vld [vmem:[#allocation5 + $0x68] sm:$0xff]   ;;  %v67_v22 = vunpack.c.l.s4 %v1128_v21  ;;  %v1129_v45 = vmov 0.0   ;;  %vm1130_vm0 = vmmov 0   ;;  %vm511_vm1 = vcmask 130048  }
  0x27   :  { %v980_v2 = vld [vmem:[#allocation5 + $0xf8] sm:$0xff]   ;;  %867 = vmatpush3.bf16.msra.mxu0 %v979_v1  ;;  %v984_v6 = vld [vmem:[#allocation5 + $0xf0] sm:$0xff]   ;;  %v987_v9 = vld [vmem:[#allocation5 + $0x28] sm:$0xff]   ;;  %v70_v29 = vshrl.u32 %v69_v23, 7  ;;  %s1131_s11 = smov [#allocation8]  }
  0x28   :  { %v981_v3 = vld [vmem:[#allocation5 + $0xb8] sm:$0xff]   ;;  %888 = vmatprep.subr.bf16.mxu1 %v980_v2  ;;  %868 = vmatprep.subr.bf16.mxu0 %v982_v4  ;;  %v985_v7 = vld [vmem:[#allocation5 + $0xb0] sm:$0xff]   ;;  %v988_v10 = vld [vmem:[#allocation5 + $0xe8] sm:$0xff]   ;;  %v68_v28 = vunpack.c.0.s8 %v67_v22 }
  0x29   :  { %889 = vmatpush3.bf16.msra.mxu1 %v981_v3  ;;  %v989_v11 = vld [vmem:[#allocation5 + $0xa8] sm:$0xff]   ;;  %v990_v12 = vld [vmem:[#allocation5 + $0x60] sm:$0xff]   ;;  %v994_v16 = vld [vmem:[#allocation5 + $0x58] sm:$0xff]  }
  0x2a   :  { %890 = vmatprep.subr.bf16.mxu1 %v984_v6  ;;  %v991_v13 = vld [vmem:[#allocation5 + $0x20] sm:$0xff]   ;;  %v995_v17 = vld [vmem:[#allocation5 + $0x18] sm:$0xff]   ;;  %v998_v20 = vld [vmem:[#allocation5 + $0x50] sm:$0xff]   ;;  %v71_v34 = vsub.s32 %v68_v28, %v70_v29 }
  0x2b   :  { %869 = vmatpush3.bf16.msra.mxu0 %v983_v5  ;;  %v992_v14 = vld [vmem:[#allocation5 + $0xe0] sm:$0xff]   ;;  %v996_v18 = vld [vmem:[#allocation5 + $0xd8] sm:$0xff]   ;;  %v999_v24 = vld [vmem:[#allocation5 + $0x10] sm:$0xff]  }
  0x2c   :  { %870 = vmatprep.subr.bf16.mxu0 %v986_v8  ;;  %v993_v15 = vld [vmem:[#allocation5 + $0xa0] sm:$0xff]   ;;  %v997_v19 = vld [vmem:[#allocation5 + $0x98] sm:$0xff]   ;;  %v1000_v25 = vld [vmem:[#allocation5 + $0xd0] sm:$0xff]  }
  0x2d   :  { %891 = vmatpush3.bf16.msra.mxu1 %v985_v7  ;;  %v1001_v26 = vld [vmem:[#allocation5 + $0x90] sm:$0xff]   ;;  %v1002_v27 = vld [vmem:[#allocation5 + $0x48] sm:$0xff]   ;;  %v1006_v33 = vld [vmem:[#allocation5 + $0x40] sm:$0xff]  }
  0x2e   :  { %892 = vmatprep.subr.bf16.mxu1 %v988_v10  ;;  %v1003_v30 = vld [vmem:[#allocation5 + $0x8] sm:$0xff]   ;;  %v1007_v35 = vld [vmem:[#allocation5] sm:$0xff]   ;;  %v61_v37 = vld [vmem:[#allocation2] sm:$0xff] }
  0x2f   :  { %871 = vmatpush3.bf16.msra.mxu0 %v987_v9  ;;  %v1004_v31 = vld [vmem:[#allocation5 + $0xc8] sm:$0xff]   ;;  %v1008_v36 = vld [vmem:[#allocation5 + $0xc0] sm:$0xff]   ;;  %v72_v38 = vrot.slane %v61_v37, %v71_v34  ;;  %v65_v40 = vcombine.high %v61_v37, %v61_v37  ;;  %v1010_v41 = vld [vmem:[#allocation5 + $0x178] sm:$0xff]  }
  0x30   :  { %872 = vmatprep.subr.bf16.mxu0 %v990_v12  ;;  %v1005_v32 = vld [vmem:[#allocation5 + $0x88] sm:$0xff]   ;;  %v1009_v39 = vld [vmem:[#allocation5 + $0x80] sm:$0xff]   ;;  %v1012_v48 = vld [vmem:[#allocation5 + $0x138] sm:$0xff]  }
  0x31   :  { %893 = vmatpush3.bf16.msra.mxu1 %v989_v11  ;;  %v80_v42 = vcombine.high %v72_v38, %v72_v38  ;;  %v79_v43 = vrot.slane %v65_v40, %v71_v34  ;;  %v105_v44 = vpack.c.bf16 %v72_v38, %v72_v38  ;;  %v1013_v50 = vld [vmem:[#allocation5 + $0x170] sm:$0xff]   ;;  %v1015_v53 = vld [vmem:[#allocation5 + $0x168] sm:$0xff]   ;;  %v1017_v55 = vld [vmem:[#allocation5 + $0x160] sm:$0xff]  }
  0x32   :  { %894 = vmatprep.subr.bf16.mxu1 %v992_v14  ;;  %v1014_v52 = vld [vmem:[#allocation5 + $0x130] sm:$0xff]   ;;  %v1016_v54 = vld [vmem:[#allocation5 + $0x128] sm:$0xff]   ;;  %v1018_v56 = vld [vmem:[#allocation5 + $0x120] sm:$0xff]  }
  0x33   :  { %873 = vmatpush3.bf16.msra.mxu0 %v991_v13  ;;  %v106_v46 = vpack.c.bf16 %v80_v42, %v80_v42  ;;  %v81_v47 = vcombine.high %v79_v43, %v79_v43  ;;  %v107_v49 = vpack.c.bf16 %v79_v43, %v79_v43  ;;  %v1019_v57 = vld [vmem:[#allocation5 + $0x158] sm:$0xff]   ;;  %v1027_v58 = vld [vmem:[#allocation5 + $0x180] sm:$0xff]   ;;  %v1021_v63 = vld [vmem:[#allocation5 + $0x150] sm:$0xff]  }
  0x34   :  { %874 = vmatprep.subr.bf16.mxu0 %v994_v16  ;;  %v62_v59 = vld [vmem:[#allocation2 + $0x8] sm:$0x3f]  ;;  %v1022_v4 = vld [vmem:[#allocation5 + $0x110] sm:$0xff]   ;;  %v1023_v5 = vld [vmem:[#allocation5 + $0x148] sm:$0xff]  }
  0x35   :  { %895 = vmatpush3.bf16.msra.mxu1 %v993_v15  ;;  %547 = vmatprep.mubr.bf16.mxu0 %v106_v46  ;;  %v108_v51 = vpack.c.bf16 %v81_v47, %v81_v47  ;;  %v1020_v60 = vld [vmem:[#allocation5 + $0x118] sm:$0xff]   ;;  %v82_v61 = vcombine.high %v62_v59, %v62_v59  ;;  %v89_v62 = vrot.slane %v62_v59, %v71_v34  ;;  %v1024_v6 = vld [vmem:[#allocation5 + $0x108] sm:$0xff]   ;;  %v1025_v7 = vld [vmem:[#allocation5 + $0x140] sm:$0xff]  }
  0x36   :  { %896 = vmatprep.subr.bf16.mxu1 %v996_v18  ;;  %v1026_v8 = vld [vmem:[#allocation5 + $0x100] sm:$0xff]   ;;  %v1030_v11 = vld [vmem:[#allocation7 + $0x30] sm:$0xff]   ;;  %v1031_v12 = vld [vmem:[#allocation7 + $0x28] sm:$0xff]  }
  0x37   :  { %875 = vmatpush3.bf16.msra.mxu0 %v995_v17  ;;  %587 = vmatprep.mubr.bf16.mxu1 %v108_v51  ;;  %v96_v0 = vrot.slane %v82_v61, %v71_v34  ;;  %v97_v1 = vcombine.high %v89_v62, %v89_v62  ;;  %v109_v9 = vpack.c.bf16 %v89_v62, %v89_v62  ;;  %v1029_v10 = vld [vmem:[#allocation7 + $0x38] sm:$0xff]   ;;  %v1032_v13 = vld [vmem:[#allocation7 + $0x20] sm:$0xff]   ;;  %v1034_v15 = vld [vmem:[#allocation7 + $0x10] sm:$0xff]  }
  0x38   :  { %876 = vmatprep.subr.bf16.mxu0 %v998_v20  ;;  %v1033_v14 = vld [vmem:[#allocation7 + $0x18] sm:$0xff]   ;;  %v1035_v16 = vld [vmem:[#allocation7 + $0x8] sm:$0xff]   ;;  %v1036_v17 = vld [vmem:[#allocation7] sm:$0xff]  }
  0x39   :  { %897 = vmatpush3.bf16.msra.mxu1 %v997_v19  ;;  %v110_v2 = vpack.c.bf16 %v97_v1, %v97_v1  ;;  %v111_v3 = vpack.c.bf16 %v96_v0, %v96_v0 }
  0x3a   :  { %898 = vmatprep.subr.bf16.mxu1 %v1000_v25 }
  0x3b   :  { %877 = vmatpush3.bf16.msra.mxu0 %v999_v24 }
  0x3c   :  { %878 = vmatprep.subr.bf16.mxu0 %v1002_v27 }
  0x3d   :  { %899 = vmatpush3.bf16.msra.mxu1 %v1001_v26 }
  0x3e   :  { %900 = vmatprep.subr.bf16.mxu1 %v1004_v31  ;;  %v806_v31 = vld [vmem:[%s1196_s2] ss:$0 sm:$0xff]  ;;  %s796_s2 = sshll.u32 %s1131_s11, 4  ;;  %s797_s2 = int_to_ptr.vmem [resolvable:$true] %s796_s2 }
  0x3f   :  { %879 = vmatpush3.bf16.msra.mxu0 %v1003_v30  ;;  %s1097_s12 = scalar_lea.vmem %s797_s2, 16  ;;  %s1101_s13 = scalar_lea.vmem %s797_s2, 32 }
  0x40   :  { %880 = vmatprep.subr.bf16.mxu0 %v1006_v33  ;;  %p1098_p1 = scmp.ne.s32.totalorder %s797_s2, %s1097_s12  ;;  %p1102_p2 = scmp.lt.s32.totalorder %s797_s2, %s797_s2 }
  0x41   :  { %901 = vmatpush3.bf16.msra.mxu1 %v1005_v32  ;;  %p1103_p3 = scmp.lt.s32.totalorder %s1101_s13, %s1097_s12 }
  0x42   :  { %902 = vmatprep.subr.bf16.mxu1 %v1008_v36 }
  0x43   :  { %881 = vmatpush3.bf16.msra.mxu0 %v1007_v35  ;;  %p1104_p4 = por %p1103_p3, %p1102_p2 }
  0x44   :  { %910 = vmatprep.subr.bf16.mxu0 %v1010_v41 }
  0x45   :  { %903 = vmatpush3.bf16.msra.mxu1 %v1009_v39  ;;  %p1105_p5 = pnand %p1104_p4, %p1098_p1 }
  0x46   :  { %943 = vmatprep.subr.bf16.mxu1 %v1129_v45  ;;  %548 = vmatmul.mubr.bf16.vlgmr.msra.gmra.mxu0 %v105_v44  ;;  %v857_v44 = vld [vmem:[%s1198_s4] ss:$0 sm:$0xff] }
  0x47   :  { %911 = vmatpush3.bf16.msra.mxu0 %v1012_v48  ;;  %627 = vmatprep.mubr.bf16.mxu0 %v110_v2 }
  0x48   :  { %588 = vmatmul.mubr.bf16.vlgmr.msra.gmra.mxu1 %v107_v49  ;;  %912 = vmatprep.subr.bf16.mxu0 %v1013_v50 }
  0x49   :  { %945 = vmatprep.mubr.msk.bf16.mxu1 %vm1130_vm0, %v1129_v45  ;;  %944 = vmatpush3.bf16.msra.mxu1 %v1027_v58 }
  0x4a   :  { %949 = vmatprep.subr.bf16.mxu1 %v1129_v45 }
  0x4b   :  { %913 = vmatpush3.bf16.msra.mxu0 %v1014_v52 }
  0x4c   :  { %914 = vmatprep.subr.bf16.mxu0 %v1015_v53 }
  0x4f   :  { %915 = vmatpush3.bf16.msra.mxu0 %v1016_v54 }
  0x50   :  { %916 = vmatprep.subr.bf16.mxu0 %v1017_v55  ;;  %946 = vmatmul.mubr.msk.bf16.vlgmr.msra.gmra.mxu1 %vm511_vm1, %v111_v3 }
  0x51   :  { %965 = vmatprep.mubr.msk.bf16.mxu1 %vm1130_vm0, %v1129_v45  ;;  %950 = vmatpush3.bf16.msra.mxu1 %v1029_v10 }
  0x52   :  { %951 = vmatprep.subr.bf16.mxu1 %v1129_v45 }
  0x53   :  { %917 = vmatpush3.bf16.msra.mxu0 %v1018_v56 }
  0x54   :  { %918 = vmatprep.subr.bf16.mxu0 %v1019_v57 }
  0x55   :  { %952 = vmatpush3.bf16.msra.mxu1 %v1030_v11 }
  0x56   :  { %953 = vmatprep.subr.bf16.mxu1 %v1129_v45 }
  0x57   :  { %919 = vmatpush3.bf16.msra.mxu0 %v1020_v60 }
  0x58   :  { %920 = vmatprep.subr.bf16.mxu0 %v1021_v63 }
  0x59   :  { %954 = vmatpush3.bf16.msra.mxu1 %v1031_v12 }
  0x5a   :  { %955 = vmatprep.subr.bf16.mxu1 %v1129_v45 }
  0x5b   :  { %921 = vmatpush3.bf16.msra.mxu0 %v1022_v4 }
  0x5c   :  { %922 = vmatprep.subr.bf16.mxu0 %v1023_v5 }
  0x5d   :  { %956 = vmatpush3.bf16.msra.mxu1 %v1032_v13 }
  0x5e   :  { %957 = vmatprep.subr.bf16.mxu1 %v1129_v45 }
  0x5f   :  { %923 = vmatpush3.bf16.msra.mxu0 %v1024_v6 }
  0x60   :  { %924 = vmatprep.subr.bf16.mxu0 %v1025_v7 }
  0x61   :  { %958 = vmatpush3.bf16.msra.mxu1 %v1033_v14 }
  0x62   :  { %959 = vmatprep.subr.bf16.mxu1 %v1129_v45 }
  0x63   :  { %925 = vmatpush3.bf16.msra.mxu0 %v1026_v8 }
  0x65   :  { %960 = vmatpush3.bf16.msra.mxu1 %v1034_v15 }
  0x66   :  { %628 = vmatmul.mubr.bf16.vlgmr.msra.gmra.mxu0 %v109_v9  ;;  %961 = vmatprep.subr.bf16.mxu1 %v1129_v45 }
  0x69   :  { %962 = vmatpush3.bf16.msra.mxu1 %v1035_v16 }
  0x6a   :  { %963 = vmatprep.subr.bf16.mxu1 %v1129_v45 }
  0x6d   :  { %964 = vmatpush3.bf16.msra.mxu1 %v1036_v17 }
 0x106   :  { %v882_v18 = vpop.f32.mrf.mxu0 }
 0x108   :  { %v883_v19 = vpop.f32.mrf.mxu0  ;;  %v904_v20 = vpop.f32.mrf.mxu1 }
 0x109   :  { %v884_v30 = vadd.f32 %v883_v19, %v882_v18 }
 0x10a   :  { %v885_v21 = vpop.f32.mrf.mxu0  ;;  %v905_v22 = vpop.f32.mrf.mxu1 }
 0x10b   :  { %v550_v32 = vadd.f32 %v884_v30, %v806_v31  ;;  %v906_v33 = vadd.f32 %v905_v22, %v904_v20 }
 0x10c   :  { %v886_v23 = vpop.f32.mrf.mxu0  ;;  %v907_v24 = vpop.f32.mrf.mxu1 }
 0x10d   :  { %v590_v36 = vadd.f32 %v906_v33, %v550_v32 }
 0x10e   :  { %v908_v25 = vpop.f32.mrf.mxu1 }
 0x110   :  { %v669_v26 = vpop.f32.mrf.mxu1 }
 0x112   :  { %v947_v27 = vpop.f32.mrf.mxu1 }
 0x114   :  { %v672_v28 = vpop.f32.mrf.mxu1 }
 0x116   :  { %v948_v29 = vpop.f32.mrf.mxu1 }
 0x126   :  { %v926_v34 = vpop.f32.mrf.mxu0 }
 0x128   :  { %v927_v35 = vpop.f32.mrf.mxu0 }
 0x129   :  { %v928_v37 = vadd.f32 %v927_v35, %v926_v34 }
 0x12a   :  { %v929_v38 = vpop.f32.mrf.mxu0 }
 0x12b   :  { %v630_v39 = vadd.f32 %v928_v37, %v590_v36 }
 0x12c   :  { %v930_v40 = vpop.f32.mrf.mxu0 }
 0x12d   :  { %v670_v41 = vadd.f32 %v669_v26, %v630_v39 }
 0x12f   :  { %v675_v42 = vmax.f32 %v670_v41, 0.0 }
 0x131   :  { %v676_v43 = vpack.c.bf16 %v675_v42, %v675_v42 }
 0x133   :  { %966 = vmatmul.mubr.bf16.vlgmr.msra.gmra.mxu1 %v676_v43 }
 0x1f3   :  { %v782_v45 = vpop.f32.mrf.mxu1 }
 0x1f4   :  { %v783_v46 = vadd.f32 %v857_v44, %v782_v45 }
 0x1f5   :  { %v967_v47 = vpop.f32.mrf.mxu1 }
 0x1f6   :  { %v788_v48 = vpack.c.bf16 %v783_v46, %v783_v46 }
 0x1f7   :  { %v785_v49 = vpop.f32.mrf.mxu1 }
 0x1f8   :  { %789 = vst [vmem:[#allocation8] sm:$0x1] %v788_v48 }
 0x1f9   :  { %v968_v50 = vpop.f32.mrf.mxu1 }
 0x1fa   :  { %1108 = shalt.err (!%p1105_p5)
}
 0x1fb   :  { %799 = dma.vmem_to_hbm [thread:$0]  %s797_s2, 16, %s1199_s5, [#allocation4]  }
 0x1fc   :  { %1121 = dma.done.wait [#allocation4], 16  }
 0x1fd   :  { %1122 = vsyncadd [#allocation4], 4294967280 }
 0x1fe   :  { %803 = vsyncpa [#allocation3], 1 }
 0x1ff   :  { %804 = vsyncpa [#allocation6], 1 }
 0x200   :  { %805 = vsyncpa [#allocation4], 1 }

</bundles_post_ra>
